<compile_context>
chip_gen: v7x
topology: tpu7x:2x2x1
jax: 0.10.0
libtpu: 0.0.40
codegen_flags: <defaults>
</compile_context>

<pallas_src>
import functools
import math

import jax
import jax.numpy as jnp
from jax import lax
from jax.experimental import pallas as pl
from jax.experimental.pallas import tpu as pltpu

_EPS = 1e-5                         # nn.LayerNorm default eps
_REF_PREC = lax.Precision.HIGHEST   # reference only; kernels use bf16 MXU


def _layernorm(x, g, b, eps=_EPS):
    mean = jnp.mean(x, axis=-1, keepdims=True)
    var = jnp.mean((x - mean) ** 2, axis=-1, keepdims=True)
    return (x - mean) * lax.rsqrt(var + eps) * g + b


# ----------------------------------------------------------------------------
# Stage 1: LayerNorm1 + positional-embedding add + fused QK projection + V proj.
# Blocks are (ts, D) rows of the batch-major (B, S, D) activations.
# ----------------------------------------------------------------------------
def _ln1_qkv_kernel(x_ref, f_ref, g_ref, b_ref, wqk_ref, bqk_ref, wv_ref, bv_ref,
                    q_ref, k_ref, v_ref):
    d = q_ref.shape[-1]
    x = x_ref[...].astype(jnp.float32)
    ln = _layernorm(x, g_ref[...], b_ref[...])
    qk_in = (ln + f_ref[...]).astype(jnp.bfloat16)          # with_pos_embed(src2, freqs)
    qk = jnp.dot(qk_in, wqk_ref[...],
                 preferred_element_type=jnp.float32) + bqk_ref[...]
    q_ref[...] = qk[:, :d].astype(q_ref.dtype)
    k_ref[...] = qk[:, d:].astype(k_ref.dtype)
    v = jnp.dot(ln.astype(jnp.bfloat16), wv_ref[...],
                preferred_element_type=jnp.float32) + bv_ref[...]
    v_ref[...] = v.astype(v_ref.dtype)


# ----------------------------------------------------------------------------
# Stage 2: multi-head SDPA for one (batch, q-tile).  Q block is (tq, D), K/V are
# (S, D); heads are contiguous lane chunks; ctx is written back lane-dense (tq, D).
# ----------------------------------------------------------------------------
def _mha_kernel(q_ref, k_ref, v_ref, o_ref, *, nhead, scale):
    d = q_ref.shape[-1]
    hd = d // nhead
    q = q_ref[...]
    k = k_ref[...]
    v = v_ref[...]
    ctxs = []
    for h in range(nhead):                                   # static per-head loop
        sl = slice(h * hd, (h + 1) * hd)
        s = jnp.einsum("qd,kd->qk", q[:, sl], k[:, sl],
                       preferred_element_type=jnp.float32) * scale
        # TODO(synk): add attn_mask / key_padding_mask here when needed.
        m = jnp.max(s, axis=-1, keepdims=True)
        p = jnp.exp(s - m)
        p = p * pl.reciprocal(jnp.sum(p, axis=-1, keepdims=True), approx=True)
        ctxs.append(jnp.dot(p.astype(jnp.bfloat16), v[:, sl],
                            preferred_element_type=jnp.float32))
    o_ref[...] = jnp.concatenate(ctxs, axis=-1).astype(o_ref.dtype)


# ----------------------------------------------------------------------------
# Stage 3: out-proj + residual + LayerNorm2 + FF-chunked FFN + residual.
# Grid (B, n_s, n_ff); the FF axis is a reduction with VMEM accumulators.
# ----------------------------------------------------------------------------
def _outproj_ffn_kernel(ctx_ref, x_ref, wo_ref, bo_ref, g2_ref, b2_ref,
                        w1_ref, b1_ref, w2_ref, b2f_ref, o_ref,
                        src1_sc, ln_sc, acc_sc):
    f = pl.program_id(2)
    nf = pl.num_programs(2)

    @pl.when(f == 0)
    def _():
        attn = jnp.dot(ctx_ref[...], wo_ref[...],
                       preferred_element_type=jnp.float32) + bo_ref[...]
        src1 = x_ref[...].astype(jnp.float32) + attn          # + dropout1(src2), eval
        src1_sc[...] = src1
        ln_sc[...] = _layernorm(src1, g2_ref[...], b2_ref[...]).astype(jnp.bfloat16)
        acc_sc[...] = jnp.zeros_like(acc_sc)

    h = jnp.dot(ln_sc[...], w1_ref[...],
                preferred_element_type=jnp.float32) + b1_ref[...]
    h = jnp.maximum(h, 0.0).astype(jnp.bfloat16)              # ReLU (+ dropout, eval)
    acc_sc[...] += jnp.dot(h, w2_ref[...], preferred_element_type=jnp.float32)

    @pl.when(f == nf - 1)
    def _():
        o_ref[...] = (src1_sc[...] + acc_sc[...] + b2f_ref[...]).astype(o_ref.dtype)


# ------------------------------ wrapper helpers -------------------------------
def _pick_tile(n, target):
    """Largest multiple-of-8 divisor of n that is <= target; falls back to n."""
    best = None
    t = 8
    while t <= min(n, target):
        if n % t == 0:
            best = t
        t += 8
    return best if best is not None else n


def _bytes(shape, dtype):
    return math.prod(shape) * jnp.dtype(dtype).itemsize


def _vmem_limit(tiles):
    """Rough scoped-VMEM upper bound: 2x (double buffer) every block + 2 MiB margin."""
    need = 2 * sum(_bytes(s, d) for s, d in tiles)
    return int(min(64 * 2 ** 20, max(need + 2 * 2 ** 20, 8 * 2 ** 20)))


def _vmem_capacity_bytes():
    try:
        return int(pltpu.get_tpu_info().vmem_capacity_bytes)
    except Exception:
        return 64 * 2 ** 20       # assume the smallest (v7x-like) if the query fails


def encoder_layer_forward(src, params, *, nhead, freqs=None):
    """src: (S, B, D); freqs: (>=S, D) or None. Eval-mode forward. Returns (S, B, D)."""
    S, B, D = src.shape
    assert D % nhead == 0, "d_model must be divisible by nhead"
    hd = D // nhead
    FF = params["w1"].shape[1]
    dtype = src.dtype
    bf, f32 = jnp.bfloat16, jnp.float32

    if freqs is None:
        # TODO(synk): skip the positional add entirely instead of adding a zero slab.
        freqs_s = jnp.zeros((S, D), f32)
    else:
        if freqs.shape[1] != D:
            raise ValueError(f"Frequency dimension mismatch: {freqs.shape[1]} vs {D}")
        freqs_s = freqs[:S].astype(f32)

    # bf16 weights (native MXU rate, half the weight DMA); f32 biases / LN params.
    wqk = jnp.concatenate([params["wq"], params["wk"]], axis=1).astype(bf)    # (D, 2D)
    bqk = jnp.concatenate([params["bq"], params["bk"]], axis=1).astype(f32)   # (1, 2D)
    wv, wo = params["wv"].astype(bf), params["wo"].astype(bf)
    w1, w2 = params["w1"].astype(bf), params["w2"].astype(bf)
    ln1_g, ln1_b = params["ln1_g"].astype(f32), params["ln1_b"].astype(f32)
    ln2_g, ln2_b = params["ln2_g"].astype(f32), params["ln2_b"].astype(f32)
    bv, bo = params["bv"].astype(f32), params["bo"].astype(f32)
    b1, b2 = params["b1"].astype(f32), params["b2"].astype(f32)

    # Batch-major internal layout: stage 2 reads contiguous per-batch slabs and all
    # head-layout changes ride on block DMAs (no host-side Q/K/V/ctx transposes).
    x = src.transpose(1, 0, 2)                                 # (B, S, D)

    vmem_cap = _vmem_capacity_bytes()
    row_target = 1024 if vmem_cap >= (96 << 20) else 512       # bigger tiles on 128 MiB parts
    ts = _pick_tile(S, row_target)                             # row tile (stages 1 & 3)
    tq = _pick_tile(S, min(row_target, 512))                   # query tile (stage 2)
    tff = _pick_tile(FF, 512)                                  # FF chunk (mult. of 256 at real sizes)
    n_s, n_q, n_ff = S // ts, S // tq, FF // tff

    # ---- stage 1: LN1 + pos-embed + fused QK projection + V projection --------
    row_in = pl.BlockSpec((None, ts, D), lambda b, si: (b, si, 0))
    full2 = lambda shape: pl.BlockSpec(shape, lambda b, si: (0, 0))
    limit1 = _vmem_limit([((ts, D), f32), ((ts, D), f32), ((1, D), f32), ((1, D), f32),
                          ((D, 2 * D), bf), ((1, 2 * D), f32), ((D, D), bf), ((1, D), f32),
                          ((ts, D), bf), ((ts, D), bf), ((ts, D), bf),
                          ((ts, 2 * D), f32)])
    q, k, v = pl.pallas_call(
        _ln1_qkv_kernel,
        out_shape=(jax.ShapeDtypeStruct((B, S, D), bf),) * 3,
        grid=(B, n_s),
        in_specs=[
            row_in,
            pl.BlockSpec((ts, D), lambda b, si: (si, 0)),      # freqs slab, no HBM broadcast
            full2((1, D)), full2((1, D)),
            full2((D, 2 * D)), full2((1, 2 * D)),
            full2((D, D)), full2((1, D)),
        ],
        out_specs=[row_in, row_in, row_in],
        compiler_params=pltpu.CompilerParams(
            dimension_semantics=("parallel", "parallel"),
            vmem_limit_bytes=limit1),
    )(x, freqs_s, ln1_g, ln1_b, wqk, bqk, wv, bv)

    # ---- stage 2: per-(batch, q-tile) multi-head attention, lane-dense ctx ----
    q_spec = pl.BlockSpec((None, tq, D), lambda b, qi: (b, qi, 0))
    kv_spec = pl.BlockSpec((None, S, D), lambda b, qi: (b, 0, 0))
    limit2 = _vmem_limit([((tq, D), bf), ((S, D), bf), ((S, D), bf), ((tq, D), bf),
                          ((nhead, tq, S), f32), ((tq, D), f32)])
    ctx = pl.pallas_call(
        functools.partial(_mha_kernel, nhead=nhead, scale=1.0 / math.sqrt(hd)),
        out_shape=jax.ShapeDtypeStruct((B, S, D), bf),
        grid=(B, n_q),
        in_specs=[q_spec, kv_spec, kv_spec],
        out_specs=q_spec,
        compiler_params=pltpu.CompilerParams(
            dimension_semantics=("parallel", "parallel"),
            vmem_limit_bytes=limit2),
    )(q, k, v)
    # TODO(synk): flash-style kv tiling (online softmax) for very long S on v7x.

    # ---- stage 3: out-proj + residual + LN2 + FF-chunked FFN + residual -------
    row3 = pl.BlockSpec((None, ts, D), lambda b, si, f: (b, si, 0))
    full3 = lambda shape: pl.BlockSpec(shape, lambda b, si, f: (0, 0))
    w1_spec = pl.BlockSpec((D, tff), lambda b, si, f: (0, f))
    b1_spec = pl.BlockSpec((1, tff), lambda b, si, f: (0, f))
    w2_spec = pl.BlockSpec((tff, D), lambda b, si, f: (f, 0))
    limit3 = _vmem_limit([((ts, D), bf), ((ts, D), f32),
                          ((D, D), bf), ((1, D), f32), ((1, D), f32), ((1, D), f32),
                          ((D, tff), bf), ((1, tff), f32), ((tff, D), bf), ((1, D), f32),
                          ((ts, D), f32),                              # output block
                          ((ts, D), f32), ((ts, D), bf), ((ts, D), f32),  # scratch
                          ((ts, tff), f32)])                           # ReLU intermediate
    out_bsd = pl.pallas_call(
        _outproj_ffn_kernel,
        out_shape=jax.ShapeDtypeStruct((B, S, D), dtype),
        grid=(B, n_s, n_ff),
        in_specs=[row3, row3,
                  full3((D, D)), full3((1, D)), full3((1, D)), full3((1, D)),
                  w1_spec, b1_spec, w2_spec, full3((1, D))],
        out_specs=row3,
        scratch_shapes=[pltpu.VMEM((ts, D), jnp.float32),      # src1 (residual)
                        pltpu.VMEM((ts, D), jnp.bfloat16),     # LN2 output
                        pltpu.VMEM((ts, D), jnp.float32)],     # FFN accumulator
        input_output_aliases={1: 0},                           # donate x buffer to output
        compiler_params=pltpu.CompilerParams(
            dimension_semantics=("parallel", "parallel", "arbitrary"),
            vmem_limit_bytes=limit3),
    )(ctx, x, wo, bo, ln2_g, ln2_b, w1, b1, w2, b2)

    return out_bsd.transpose(1, 0, 2)                          # back to (S, B, D)


# ------------------------------ plain-JAX reference ---------------------------
def ref_forward(src, params, *, nhead, freqs=None):
    S, B, D = src.shape
    H, hd = nhead, D // nhead

    def ln(x, g, b):
        m = x.mean(-1, keepdims=True)
        v = ((x - m) ** 2).mean(-1, keepdims=True)
        return (x - m) / jnp.sqrt(v + _EPS) * g + b

    src2 = ln(src, params["ln1_g"], params["ln1_b"])
    qk = src2 if freqs is None else src2 + freqs[:S][:, None, :]
    q = jnp.einsum("sbd,de->sbe", qk, params["wq"], precision=_REF_PREC) + params["bq"]
    k = jnp.einsum("sbd,de->sbe", qk, params["wk"], precision=_REF_PREC) + params["bk"]
    v = jnp.einsum("sbd,de->sbe", src2, params["wv"], precision=_REF_PREC) + params["bv"]

    def split(x):
        return x.reshape(S, B, H, hd).transpose(1, 2, 0, 3)

    qh, kh, vh = split(q), split(k), split(v)
    s = jnp.einsum("bhqd,bhkd->bhqk", qh, kh, precision=_REF_PREC) / float(hd) ** 0.5
    p = jax.nn.softmax(s, axis=-1)
    ctx = jnp.einsum("bhqk,bhkd->bhqd", p, vh, precision=_REF_PREC)
    ctx = ctx.transpose(2, 0, 1, 3).reshape(S, B, D)

    attn_out = jnp.einsum("sbd,de->sbe", ctx, params["wo"], precision=_REF_PREC) + params["bo"]
    src1 = src + attn_out
    src2b = ln(src1, params["ln2_g"], params["ln2_b"])
    h = jax.nn.relu(jnp.einsum("sbd,df->sbf", src2b, params["w1"], precision=_REF_PREC) + params["b1"])
    y = jnp.einsum("sbf,fd->sbd", h, params["w2"], precision=_REF_PREC) + params["b2"]
    return src1 + y


if __name__ == "__main__":
    # Small deterministic config: seq=8, batch=2, d_model=32, nhead=4, ffn=64.
    S, B, D, H, FF = 8, 2, 32, 4, 64

    key = jax.random.PRNGKey(0)
    ks = jax.random.split(key, 12)

    def w(k_, shape):
        return jax.random.normal(k_, shape, jnp.float32) / jnp.sqrt(float(shape[0]))

    # Weights stored pre-transposed (in_dim, out_dim) so kernels do x @ W.
    params = dict(
        ln1_g=jnp.ones((1, D), jnp.float32), ln1_b=jnp.zeros((1, D), jnp.float32),
        ln2_g=jnp.ones((1, D), jnp.float32), ln2_b=jnp.zeros((1, D), jnp.float32),
        wq=w(ks[0], (D, D)), bq=0.02 * jax.random.normal(ks[1], (1, D), jnp.float32),
        wk=w(ks[2], (D, D)), bk=0.02 * jax.random.normal(ks[3], (1, D), jnp.float32),
        wv=w(ks[4], (D, D)), bv=0.02 * jax.random.normal(ks[5], (1, D), jnp.float32),
        wo=w(ks[6], (D, D)), bo=jnp.zeros((1, D), jnp.float32),
        w1=w(ks[7], (D, FF)), b1=0.02 * jax.random.normal(ks[8], (1, FF), jnp.float32),
        w2=w(ks[9], (FF, D)), b2=jnp.zeros((1, D), jnp.float32),
    )

    src = jax.random.normal(ks[10], (S, B, D), jnp.float32)
    freqs = 0.5 * jax.random.normal(ks[11], (S, D), jnp.float32)

    out = encoder_layer_forward(src, params, nhead=H, freqs=freqs)
    out = jax.block_until_ready(out)

    ref = ref_forward(src, params, nhead=H, freqs=freqs)
    assert out.shape == (S, B, D)
    max_err = float(jnp.max(jnp.abs(out - ref)))
    # bf16 matmul operands + approx reciprocal -> looser tolerance than exact f32.
    assert max_err < 1.5e-1, f"max abs err {max_err}"

    print("KERNEL_OK")
</pallas_src>

<mosaic_0001>
module attributes {stable_mosaic.version = 11 : i64} {
  func.func @_ln1_qkv_kernel(%arg0: i32, %arg1: i32, %arg2: memref<1x8x32xf32, #tpu.memory_space<vmem>>, %arg3: memref<8x32xf32, #tpu.memory_space<vmem>>, %arg4: memref<1x32xf32, #tpu.memory_space<vmem>>, %arg5: memref<1x32xf32, #tpu.memory_space<vmem>>, %arg6: memref<32x64xbf16, #tpu.memory_space<vmem>>, %arg7: memref<1x64xf32, #tpu.memory_space<vmem>>, %arg8: memref<32x32xbf16, #tpu.memory_space<vmem>>, %arg9: memref<1x32xf32, #tpu.memory_space<vmem>>, %arg10: memref<1x8x32xbf16, #tpu.memory_space<vmem>>, %arg11: memref<1x8x32xbf16, #tpu.memory_space<vmem>>, %arg12: memref<1x8x32xbf16, #tpu.memory_space<vmem>>) attributes {dimension_semantics = [#tpu.dimension_semantics<parallel>, #tpu.dimension_semantics<parallel>], iteration_bounds = array<i64: 2, 1>, scalar_prefetch = 0 : i64, scratch_operands = 0 : i64, tpu.core_type = #tpu.core_type<tc>, window_params = [{transform_indices = @transform_0, window_bounds = array<i64: 1, 8, 32>}, {transform_indices = @transform_1, window_bounds = array<i64: 8, 32>}, {pipeline_mode = #tpu.pipeline_mode<synchronous>, transform_indices = @transform_2, window_bounds = array<i64: 1, 32>}, {pipeline_mode = #tpu.pipeline_mode<synchronous>, transform_indices = @transform_3, window_bounds = array<i64: 1, 32>}, {pipeline_mode = #tpu.pipeline_mode<synchronous>, transform_indices = @transform_4, window_bounds = array<i64: 32, 64>}, {pipeline_mode = #tpu.pipeline_mode<synchronous>, transform_indices = @transform_5, window_bounds = array<i64: 1, 64>}, {pipeline_mode = #tpu.pipeline_mode<synchronous>, transform_indices = @transform_6, window_bounds = array<i64: 32, 32>}, {pipeline_mode = #tpu.pipeline_mode<synchronous>, transform_indices = @transform_7, window_bounds = array<i64: 1, 32>}, {transform_indices = @transform_8, window_bounds = array<i64: 1, 8, 32>}, {transform_indices = @transform_9, window_bounds = array<i64: 1, 8, 32>}, {transform_indices = @transform_10, window_bounds = array<i64: 1, 8, 32>}]} {
    %c0 = arith.constant 0 : index
    %c0_0 = arith.constant 0 : index
    %c0_1 = arith.constant 0 : index
    %0 = vector.load %arg2[%c0, %c0_0, %c0_1] : memref<1x8x32xf32, #tpu.memory_space<vmem>>, vector<1x8x32xf32>
    %1 = vector.shape_cast %0 : vector<1x8x32xf32> to vector<8x32xf32>
    %c0_2 = arith.constant 0 : index
    %c0_3 = arith.constant 0 : index
    %2 = vector.load %arg4[%c0_2, %c0_3] : memref<1x32xf32, #tpu.memory_space<vmem>>, vector<1x32xf32>
    %c0_4 = arith.constant 0 : index
    %c0_5 = arith.constant 0 : index
    %3 = vector.load %arg5[%c0_4, %c0_5] : memref<1x32xf32, #tpu.memory_space<vmem>>, vector<1x32xf32>
    %cst = arith.constant dense<0.000000e+00> : vector<8xf32>
    %4 = vector.multi_reduction <add>, %1, %cst [1] : vector<8x32xf32> to vector<8xf32>
    %5 = vector.shape_cast %4 : vector<8xf32> to vector<8x1xf32>
    %cst_6 = arith.constant 3.200000e+01 : f32
    %6 = vector.broadcast %cst_6 : f32 to vector<8x1xf32>
    %7 = arith.divf %5, %6 : vector<8x1xf32>
    %8 = vector.broadcast %7 : vector<8x1xf32> to vector<8x32xf32>
    %9 = arith.subf %1, %8 : vector<8x32xf32>
    %10 = arith.mulf %9, %9 : vector<8x32xf32>
    %cst_7 = arith.constant dense<0.000000e+00> : vector<8xf32>
    %11 = vector.multi_reduction <add>, %10, %cst_7 [1] : vector<8x32xf32> to vector<8xf32>
    %12 = vector.shape_cast %11 : vector<8xf32> to vector<8x1xf32>
    %cst_8 = arith.constant 3.200000e+01 : f32
    %13 = vector.broadcast %cst_8 : f32 to vector<8x1xf32>
    %14 = arith.divf %12, %13 : vector<8x1xf32>
    %15 = vector.broadcast %7 : vector<8x1xf32> to vector<8x32xf32>
    %16 = arith.subf %1, %15 : vector<8x32xf32>
    %cst_9 = arith.constant 9.99999974E-6 : f32
    %17 = vector.broadcast %cst_9 : f32 to vector<8x1xf32>
    %18 = arith.addf %14, %17 : vector<8x1xf32>
    %19 = math.rsqrt %18 : vector<8x1xf32>
    %20 = vector.broadcast %19 : vector<8x1xf32> to vector<8x32xf32>
    %21 = arith.mulf %16, %20 : vector<8x32xf32>
    %22 = vector.broadcast %2 : vector<1x32xf32> to vector<8x32xf32>
    %23 = arith.mulf %21, %22 : vector<8x32xf32>
    %24 = vector.broadcast %3 : vector<1x32xf32> to vector<8x32xf32>
    %25 = arith.addf %23, %24 : vector<8x32xf32>
    %c0_10 = arith.constant 0 : index
    %c0_11 = arith.constant 0 : index
    %26 = vector.load %arg3[%c0_10, %c0_11] : memref<8x32xf32, #tpu.memory_space<vmem>>, vector<8x32xf32>
    %27 = arith.addf %25, %26 : vector<8x32xf32>
    %28 = arith.truncf %27 : vector<8x32xf32> to vector<8x32xbf16>
    %c0_12 = arith.constant 0 : index
    %c0_13 = arith.constant 0 : index
    %29 = vector.load %arg6[%c0_12, %c0_13] : memref<32x64xbf16, #tpu.memory_space<vmem>>, vector<32x64xbf16>
    %cst_14 = arith.constant dense<0.000000e+00> : vector<8x64xf32>
    %30 = tpu.matmul %28, %29, %cst_14 {dimension_numbers = #tpu.dot_dimension_numbers<[1], [0], [0], [1], [0, 0, 1, 1], [], []>} : vector<8x32xbf16>, vector<32x64xbf16>, vector<8x64xf32> -> vector<8x64xf32>
    %c0_15 = arith.constant 0 : index
    %c0_16 = arith.constant 0 : index
    %31 = vector.load %arg7[%c0_15, %c0_16] : memref<1x64xf32, #tpu.memory_space<vmem>>, vector<1x64xf32>
    %32 = vector.broadcast %31 : vector<1x64xf32> to vector<8x64xf32>
    %33 = arith.addf %30, %32 : vector<8x64xf32>
    %34 = vector.extract_strided_slice %33 {offsets = [0, 0], sizes = [8, 32], strides = [1, 1]} : vector<8x64xf32> to vector<8x32xf32>
    %35 = arith.truncf %34 : vector<8x32xf32> to vector<8x32xbf16>
    %c0_17 = arith.constant 0 : index
    %c0_18 = arith.constant 0 : index
    %c0_19 = arith.constant 0 : index
    %36 = vector.load %arg10[%c0_17, %c0_18, %c0_19] : memref<1x8x32xbf16, #tpu.memory_space<vmem>>, vector<1x8x32xbf16>
    %37 = vector.shape_cast %36 : vector<1x8x32xbf16> to vector<8x32xbf16>
    %38 = vector.shape_cast %35 : vector<8x32xbf16> to vector<1x8x32xbf16>
    tpu.vector_store %arg10[%c0_17, %c0_18, %c0_19], %38 {strides = array<i32>} : memref<1x8x32xbf16, #tpu.memory_space<vmem>>, vector<1x8x32xbf16>,
    %39 = vector.extract_strided_slice %33 {offsets = [0, 32], sizes = [8, 32], strides = [1, 1]} : vector<8x64xf32> to vector<8x32xf32>
    %40 = arith.truncf %39 : vector<8x32xf32> to vector<8x32xbf16>
    %c0_20 = arith.constant 0 : index
    %c0_21 = arith.constant 0 : index
    %c0_22 = arith.constant 0 : index
    %41 = vector.load %arg11[%c0_20, %c0_21, %c0_22] : memref<1x8x32xbf16, #tpu.memory_space<vmem>>, vector<1x8x32xbf16>
    %42 = vector.shape_cast %41 : vector<1x8x32xbf16> to vector<8x32xbf16>
    %43 = vector.shape_cast %40 : vector<8x32xbf16> to vector<1x8x32xbf16>
    tpu.vector_store %arg11[%c0_20, %c0_21, %c0_22], %43 {strides = array<i32>} : memref<1x8x32xbf16, #tpu.memory_space<vmem>>, vector<1x8x32xbf16>,
    %44 = arith.truncf %25 : vector<8x32xf32> to vector<8x32xbf16>
    %c0_23 = arith.constant 0 : index
    %c0_24 = arith.constant 0 : index
    %45 = vector.load %arg8[%c0_23, %c0_24] : memref<32x32xbf16, #tpu.memory_space<vmem>>, vector<32x32xbf16>
    %cst_25 = arith.constant dense<0.000000e+00> : vector<8x32xf32>
    %46 = tpu.matmul %44, %45, %cst_25 {dimension_numbers = #tpu.dot_dimension_numbers<[1], [0], [0], [1], [0, 0, 1, 1], [], []>} : vector<8x32xbf16>, vector<32x32xbf16>, vector<8x32xf32> -> vector<8x32xf32>
    %c0_26 = arith.constant 0 : index
    %c0_27 = arith.constant 0 : index
    %47 = vector.load %arg9[%c0_26, %c0_27] : memref<1x32xf32, #tpu.memory_space<vmem>>, vector<1x32xf32>
    %48 = vector.broadcast %47 : vector<1x32xf32> to vector<8x32xf32>
    %49 = arith.addf %46, %48 : vector<8x32xf32>
    %50 = arith.truncf %49 : vector<8x32xf32> to vector<8x32xbf16>
    %c0_28 = arith.constant 0 : index
    %c0_29 = arith.constant 0 : index
    %c0_30 = arith.constant 0 : index
    %51 = vector.load %arg12[%c0_28, %c0_29, %c0_30] : memref<1x8x32xbf16, #tpu.memory_space<vmem>>, vector<1x8x32xbf16>
    %52 = vector.shape_cast %51 : vector<1x8x32xbf16> to vector<8x32xbf16>
    %53 = vector.shape_cast %50 : vector<8x32xbf16> to vector<1x8x32xbf16>
    tpu.vector_store %arg12[%c0_28, %c0_29, %c0_30], %53 {strides = array<i32>} : memref<1x8x32xbf16, #tpu.memory_space<vmem>>, vector<1x8x32xbf16>,
    return
  }
  func.func @transform_0(%arg0: i32, %arg1: i32) -> (i32, i32, i32) {
    %c0_i32 = arith.constant 0 : i32
    %c0_i32_0 = arith.constant 0 : i32
    return %arg0, %arg1, %c0_i32 : i32, i32, i32
  }
  func.func @transform_1(%arg0: i32, %arg1: i32) -> (i32, i32) {
    %c0_i32 = arith.constant 0 : i32
    %c0_i32_0 = arith.constant 0 : i32
    return %arg1, %c0_i32 : i32, i32
  }
  func.func @transform_2(%arg0: i32, %arg1: i32) -> (i32, i32) {
    %c0_i32 = arith.constant 0 : i32
    %c0_i32_0 = arith.constant 0 : i32
    %c0_i32_1 = arith.constant 0 : i32
    return %c0_i32, %c0_i32_0 : i32, i32
  }
  func.func @transform_3(%arg0: i32, %arg1: i32) -> (i32, i32) {
    %c0_i32 = arith.constant 0 : i32
    %c0_i32_0 = arith.constant 0 : i32
    %c0_i32_1 = arith.constant 0 : i32
    return %c0_i32, %c0_i32_0 : i32, i32
  }
  func.func @transform_4(%arg0: i32, %arg1: i32) -> (i32, i32) {
    %c0_i32 = arith.constant 0 : i32
    %c0_i32_0 = arith.constant 0 : i32
    %c0_i32_1 = arith.constant 0 : i32
    return %c0_i32, %c0_i32_0 : i32, i32
  }
  func.func @transform_5(%arg0: i32, %arg1: i32) -> (i32, i32) {
    %c0_i32 = arith.constant 0 : i32
    %c0_i32_0 = arith.constant 0 : i32
    %c0_i32_1 = arith.constant 0 : i32
    return %c0_i32, %c0_i32_0 : i32, i32
  }
  func.func @transform_6(%arg0: i32, %arg1: i32) -> (i32, i32) {
    %c0_i32 = arith.constant 0 : i32
    %c0_i32_0 = arith.constant 0 : i32
    %c0_i32_1 = arith.constant 0 : i32
    return %c0_i32, %c0_i32_0 : i32, i32
  }
  func.func @transform_7(%arg0: i32, %arg1: i32) -> (i32, i32) {
    %c0_i32 = arith.constant 0 : i32
    %c0_i32_0 = arith.constant 0 : i32
    %c0_i32_1 = arith.constant 0 : i32
    return %c0_i32, %c0_i32_0 : i32, i32
  }
  func.func @transform_8(%arg0: i32, %arg1: i32) -> (i32, i32, i32) {
    %c0_i32 = arith.constant 0 : i32
    %c0_i32_0 = arith.constant 0 : i32
    return %arg0, %arg1, %c0_i32 : i32, i32, i32
  }
  func.func @transform_9(%arg0: i32, %arg1: i32) -> (i32, i32, i32) {
    %c0_i32 = arith.constant 0 : i32
    %c0_i32_0 = arith.constant 0 : i32
    return %arg0, %arg1, %c0_i32 : i32, i32, i32
  }
  func.func @transform_10(%arg0: i32, %arg1: i32) -> (i32, i32, i32) {
    %c0_i32 = arith.constant 0 : i32
    %c0_i32_0 = arith.constant 0 : i32
    return %arg0, %arg1, %c0_i32 : i32, i32, i32
  }
}

</mosaic_0001>

<bundles_post_ra>
// kernel: tpu_custom_call.1
= control target key start
LH: loop header
LB: loop body
LE: loop exit
PB: predicated region body
PF: predicated region fallthrough
CT: control target
= control target key end

     0   :  { %s1651_s0 = inlined_call_operand.hbm [shape: f32[2,8,32], index: 0, kind: input, shape index: {}]   ;;  %s1652_s1 = inlined_call_operand.hbm [shape: f32[8,32], index: 1, kind: input, shape index: {}]   ;;  %s1653_s2 = inlined_call_operand.vmem [shape: f32[1,32], index: 2, kind: input, shape index: {}]   ;;  %s1654_s3 = inlined_call_operand.vmem [shape: f32[1,32], index: 3, kind: input, shape index: {}]   ;;  %s1655_s4 = inlined_call_operand.hbm [shape: bf16[32,64], index: 4, kind: input, shape index: {}]   ;;  %s1656_s5 = inlined_call_operand.vmem [shape: f32[1,64], index: 5, kind: input, shape index: {}]   ;;  %s1657_s6 = inlined_call_operand.vmem [shape: bf16[32,32], index: 6, kind: input, shape index: {}]   ;;  %s1658_s7 = inlined_call_operand.vmem [shape: f32[1,32], index: 7, kind: input, shape index: {}]   ;;  %s1659_s8 = inlined_call_operand.hbm [shape: bf16[2,8,32], index: 8, kind: output, shape index: {0}]   ;;  %s1660_s9 = inlined_call_operand.hbm [shape: bf16[2,8,32], index: 9, kind: output, shape index: {1}]   ;;  %s1661_s10 = inlined_call_operand.hbm [shape: bf16[2,8,32], index: 10, kind: output, shape index: {2}]  }
   0x1   :  { %1668 = sst [smem:[#allocation18_spill]] %s1651_s0 }
   0x2   :  { %1669 = sst [smem:[#allocation19_spill]] %s1652_s1 }
   0x3   :  { %1670 = sst [smem:[#allocation20_spill]] %s1655_s4 }
   0x4   :  { %16 = vsyncpa [#allocation3], 0 }
   0x5   :  { %18 = vsyncpa [#allocation3 + $0x1], 0 }
   0x6   :  { %19 = vsyncpa [#allocation6], 0 }
   0x7   :  { %20 = vsyncpa [#allocation4], 0 }
   0x8   :  { %22 = vsyncpa [#allocation4 + $0x1], 0 }
   0x9   :  { %23 = vsyncpa [#allocation10], 0 }
   0xa   :  { %25 = vsyncpa [#allocation10 + $0x1], 0  ;;  %s1307_s13 = smov 0   ;;  %s1309_s14 = smov 0  }
   0xb   :  { %s1311_s15 = smov 0   ;;  %s1313_s16 = smov 0  }
   0xc   :  { %s1315_s17 = smov 0   ;;  %s1317_s18 = smov 0  }
   0xd LB: > { %1671 = sst [smem:[#allocation16_spill]] %s1219_s13  ;;  %s1338_s19 = sadd.s32 4294967295, %s1239_s18   ;;  %s1239_s18 = sphi %s1317_s18, %s31_s18   ;;  %s1235_s17 = sphi %s1315_s17, %s1696_s17   ;;  %s1231_s16 = sphi %s1313_s16, %s1695_s16   ;;  %s1227_s15 = sphi %s1311_s15, %s1694_s15   ;;  %s1223_s14 = sphi %s1309_s14, %s1693_s14   ;;  %s1219_s13 = sphi %s1307_s13, %s1692_s13  }
   0xe   : > { %s1662_s20 = sadd.s32 4294967294, %s1239_s18   ;;  %p65_p0 = scmp.ne.s32.totalorder %s1223_s14, %s1219_s13 }
   0xf   : > { %p1664_p1 = scmp.eq.s32.totalorder %s1338_s19, 0  ;;  %p249_p3 = scmp.eq.s32.totalorder %s1662_s20, 1 }
  0x10   : > { %p848_p5 = scmp.ge.s32.totalorder %s1239_s18, 1  ;;  %p312_p7 = scmp.lt.s32.totalorder %s1239_s18, 3 }
  0x11   : > { %p1349_p4 = por %p1664_p1, %p65_p0  ;;  %p1354_p6 = por %p249_p3, %p65_p0 }
  0x12   : > { %p1359_p8 = pnand %p848_p5, %p312_p7  ;;  %s1241_s24 = smov [#allocation5]  }
  0x13   : > { %s1672_s21 = scalar_select %p1349_p4, 1, 0 }
  0x14   : > { %s1673_s22 = scalar_select %p1354_p6, 1, 0 }
  0x15   : > { %s1675_s23 = scalar_select %p1359_p8, 1, 0 }
  0x16   : > { %1674 = sst [smem:[#allocation17_spill]] %s1673_s22  ;;  %s327_s25 = sshll.u32 %s1241_s24, 4  ;;  %s328_s25 = int_to_ptr.vmem [resolvable:$true] %s327_s25 }
  0x17   : > { %p919_p10 = pneg %p1359_p8  ;;  %s1242_s26 = smov [#allocation7]  }
  0x18   : > { %s343_s27 = sshll.u32 %s1242_s26, 4  ;;  %s1677_s1 = sld [smem:[#allocation19_spill]]  ;;  %s1372_s27 = int_to_ptr.vmem [resolvable:$true] %s343_s27 }
  0x19   : > { %p1368_p11 = pnand %p919_p10, %p1664_p1 }
  0x1b   : > { %p1009_p13 = pneg %p1368_p11 }
  0x1e   : > { %s1007_s11 = scalar_lea.hbm %s1677_s1, 128 }
  0x1f   : > { %p1008_p12 = scmp.ne.s32.totalorder %s1677_s1, %s1007_s11  ;;  %p1014_p5 = scmp.lt.u32.totalorder %s1007_s11, %s1677_s1 }
  0x21   : > { %p1010_p0 = pnand %p1009_p13, %p1008_p12 }
  0x23   : > { %p1011_p3 = pneg %p1010_p0 }
  0x25   : > { %p1016_p7 = pnand %p1014_p5, %p1011_p3 }
  0x27   : > { %1019 = shalt.err (!%p1016_p7)
}
  0x28   : > { %s1020_s22 = scalar_lea.vmem %s328_s25, 128  ;;  %p1028_p2 = scmp.lt.s32.totalorder %s328_s25, %s328_s25 }
  0x29   : > { %p1021_p10 = scmp.ne.s32.totalorder %s328_s25, %s1020_s22  ;;  %p1029_p6 = scmp.lt.s32.totalorder %s1020_s22, %s1020_s22 }
  0x2b   : > { %p1023_p9 = pnand %p1021_p10, %p1009_p13  ;;  %p1030_p4 = por %p1029_p6, %p1028_p2 }
  0x2d   : > { %p1024_p1 = pneg %p1023_p9 }
  0x2f   : > { %p1031_p8 = pnand %p1030_p4, %p1024_p1 }
  0x31   : > { %1034 = shalt.err (!%p1031_p8)
}
  0x32   : > { %922 = dma.hbm_to_vmem [thread:$0]  (!%p1368_p11), %s1677_s1, 128, %s328_s25, [#allocation6]  }
  0x33   : > { %s1678_s4 = sld [smem:[#allocation20_spill]] }
  0x39   : > { %s1035_s12 = scalar_lea.hbm %s1678_s4, 256 }
  0x3a   : > { %p1036_p9 = scmp.ne.s32.totalorder %s1678_s4, %s1035_s12  ;;  %p1042_p4 = scmp.lt.u32.totalorder %s1035_s12, %s1678_s4 }
  0x3c   : > { %p1038_p2 = pnand %p1036_p9, %p1009_p13 }
  0x3e   : > { %p1039_p1 = pneg %p1038_p2 }
  0x40   : > { %p1044_p6 = pnand %p1042_p4, %p1039_p1 }
  0x42   : > { %1047 = shalt.err (!%p1044_p6)
}
  0x43   : > { %s1048_s25 = scalar_lea.vmem %s1372_s27, 256  ;;  %p1056_p3 = scmp.lt.s32.totalorder %s1372_s27, %s1372_s27 }
  0x44   : > { %p1049_p8 = scmp.ne.s32.totalorder %s1372_s27, %s1048_s25  ;;  %p1057_p5 = scmp.lt.s32.totalorder %s1048_s25, %s1048_s25 }
  0x46   : > { %p1051_p12 = pnand %p1049_p8, %p1009_p13  ;;  %p1058_p7 = por %p1057_p5, %p1056_p3 }
  0x48   : > { %p1052_p0 = pneg %p1051_p12 }
  0x4a   : > { %p1059_p10 = pnand %p1058_p7, %p1052_p0 }
  0x4c   : > { %1062 = shalt.err (!%p1059_p10)
}
  0x4d   : > { %s1243_s13 = smov 64   ;;  %s1244_s29 = smov 4  }
  0x4e   : > { %925 = dma.hbm_to_vmem [thread:$0]  (!%p1368_p11), %s1678_s4, 256, %s1372_s27, [#allocation6], %s1243_s13, %s1243_s13, %s1244_s29  }
  0x4f   : > { %s43_s11 = sadd.s32 1, %s1235_s17  ;;  %s52_s12 = sadd.s32 1, %s1227_s15 }
  0x50   : > { %p45_p13 = scmp.ge.s32.totalorder %s43_s11, 2  ;;  %p59_p9 = scmp.ne.s32.totalorder %s1227_s15, %s1223_s14 }
  0x51   : > { %p60_p2 = scmp.eq.s32.totalorder %s1239_s18, 0  ;;  %p942_p1 = scmp.lt.s32.totalorder %s1239_s18, 2 }
  0x52   : > { %s1698_s11 = smov (%p45_p13, %s43_s11), 0  ;;  %p1679_p6 = scmp.eq.s32.totalorder %s1338_s19, 1 }
  0x53   : > { %p61_p4 = por %p60_p2, %p59_p9  ;;  %s47_s28 = ssub.s32 %s1235_s17, %s1698_s11 }
  0x54   : > { %p1431_p8 = por %p1679_p6, %p59_p9  ;;  %s366_s26 = sand.u32 1, %s1227_s15  }
  0x55   : > { %p50_p12 = scmp.eq.s32.totalorder %s47_s28, 0  ;;  %s852_s27 = sshll.u32 %s366_s26, 3 }
  0x56   : > { %s853_s22 = sshll.u32 %s1235_s17, 7  ;;  %s1681_s0 = sld [smem:[#allocation18_spill]] }
  0x57   : > { %s1440_s25 = scalar_select %p50_p12, %s1227_s15, %s52_s12  }
  0x58   : > { %s370_s20 = scalar_lea.vmem [#allocation2], %s852_s27  ;;  %p1449_p11 = pnand %p942_p1, %p61_p4 }
  0x59   : > { %s378_s1 = sshll.u32 %s370_s20, 4  ;;  %s367_s12 = scalar_lea.sflag [#allocation3], %s366_s26  ;;  %s1453_s1 = int_to_ptr.vmem [resolvable:$true] %s378_s1 }
  0x5a   : > { %p1065_p3 = pneg %p1449_p11 }
  0x5c   : > { %s1445_s30 = scalar_lea.hbm %s1681_s0, %s853_s22  ;;  %s1068_s13 = scalar_lea.hbm %s1681_s0, 256 }
  0x5d   : > { %s1063_s28 = scalar_lea.hbm %s1445_s30, 128  ;;  %p1069_p10 = scmp.lt.u32.totalorder %s1445_s30, %s1681_s0 }
  0x5e   : > { %p1064_p0 = scmp.ne.s32.totalorder %s1445_s30, %s1063_s28  ;;  %p1070_p13 = scmp.lt.u32.totalorder %s1068_s13, %s1063_s28 }
  0x5f   : > { %p1072_p2 = scmp.lt.u32.totalorder %s1063_s28, %s1445_s30 }
  0x60   : > { %p1066_p5 = pnand %p1065_p3, %p1064_p0  ;;  %p1071_p9 = por %p1070_p13, %p1069_p10 }
  0x62   : > { %p1067_p7 = pneg %p1066_p5  ;;  %p1073_p1 = por %p1072_p2, %p1071_p9 }
  0x64   : > { %p1074_p4 = pnand %p1073_p1, %p1067_p7 }
  0x66   : > { %1077 = shalt.err (!%p1074_p4)
}
  0x67   : > { %s1078_s26 = scalar_lea.vmem %s1453_s1, 128  ;;  %s1245_s27 = smov [#allocation2]  }
  0x68   : > { %p1079_p6 = scmp.ne.s32.totalorder %s1453_s1, %s1078_s26  ;;  %s1083_s22 = sshll.u32 %s1245_s27, 4  ;;  %s1084_s22 = int_to_ptr.vmem [resolvable:$false] %s1083_s22 }
  0x69   : > { %s1085_s29 = scalar_lea.vmem %s1084_s22, 256  ;;  %p1086_p5 = scmp.lt.s32.totalorder %s1453_s1, %s1084_s22 }
  0x6a   : > { %p1081_p12 = pnand %p1079_p6, %p1065_p3  ;;  %p1087_p10 = scmp.lt.s32.totalorder %s1085_s29, %s1078_s26 }
  0x6c   : > { %p1082_p0 = pneg %p1081_p12  ;;  %p1088_p13 = por %p1087_p10, %p1086_p5 }
  0x6e   : > { %p1089_p9 = pnand %p1088_p13, %p1082_p0 }
  0x70   : > { %1092 = shalt.err (!%p1089_p9)
}
  0x71   : > { %929 = dma.hbm_to_vmem [thread:$0]  (!%p1449_p11), %s1445_s30, 128, %s1453_s1, %s367_s12  }
  0x72   : > { %p1683_p7 = scmp.ne.s32.totalorder %s1675_s23, 0 }
  0x73   : > { %s1483_s28 = sand.u32 (!%p1683_p7), 1, %s1223_s14   ;;  %p1684_p3 = scmp.ne.s32.totalorder (!%p1683_p7), %s1672_s21, 0 }
  0x74   : > { %387 = sbr.rel (%p1683_p7) target bundleno = 812 (0x32c), region = 52  ;;  %s855_s13 = sshll.u32 (!%p1683_p7), %s1483_s28, 3 }
  0x75   : > { %s390_s20 = scalar_lea.sflag (!%p1683_p7), [#allocation3], %s1483_s28  ;;  %s393_s26 = scalar_lea.vmem (!%p1683_p7), [#allocation2], %s855_s13 }
  0x7b   : > { %1202 = dma.done.wait (%p1684_p3), %s390_s20, 128  }
  0x7c   : > { %1204 = vsyncadd (%p1684_p3), %s390_s20, 4294967168  ;;  %p1685_p2 = scmp.eq.s32.totalorder %s1338_s19, 0 }
  0x7e   : > { %1206 = dma.done.wait (%p1685_p2), [#allocation6], 384   ;;  %p1686_p11 = pmov %p1685_p2 }
  0x7f   : > { %vm452_vm0 = vcmask 261120   ;;  %v449_v0 = vld [vmem:[%s393_s26] sm:$0xff]  ;;  %v1246_v8 = vmov 0.0   ;;  %v1002_v9 = vld [vmem:[#allocation7] sm:$0xff]   ;;  %vm1247_vm1 = vmmov 0   ;;  %v481_v20 = vld [vmem:[#allocation5] sm:$0xff] }
  0x80   : > { %1208 = vsyncadd (%p1686_p11), [#allocation6], 4294966912  ;;  %v453_v1 = vsel %vm452_vm0, %v449_v0, 0.0  ;;  %v1001_v7 = vld [vmem:[%s1657_s6] sm:$0xff]   ;;  %895 = vmatprep.subr.bf16.mxu1 %v1246_v8  ;;  %887 = vmatprep.subr.bf16.mxu0 %v1246_v8  ;;  %v1003_v10 = vld [vmem:[%s1657_s6 + $0x8] sm:$0xff]   ;;  %s1515_s20 = sshll.u32 %s1483_s28, 2 }
  0x81   : > { %454 = vadd.xlane.f32.xlu0 %v453_v1  ;;  %896 = vmatpush3.bf16.msra.mxu1 %v1001_v7  ;;  %v1004_v11 = vld [vmem:[#allocation7 + $0x8] sm:$0xff]   ;;  %vm551_vm2 = vcmask 257024   ;;  %s1521_s4 = sshll.u32 %s1231_s16, 6  ;;  %s433_s21 = scalar_lea.vmem [#allocation8], %s1515_s20 }
  0x82   : > { %899 = vmatprep.mubr.msk.bf16.mxu1 %vm1247_vm1, %v1246_v8  ;;  %888 = vmatpush3.bf16.msra.mxu0 %v1002_v9  ;;  %v861_v16 = vld [vmem:[%s1653_s2] ss:$0 sm:$0xff]  ;;  %s654_s23 = sshll.u32 %s433_s21, 4  ;;  %s1528_s27 = scalar_lea.hbm %s1659_s8, %s1521_s4  ;;  %s1530_s23 = int_to_ptr.vmem [resolvable:$true] %s654_s23 }
  0x83   : > { %897 = vmatprep.subr.bf16.mxu1 %v1246_v8  ;;  %889 = vmatprep.subr.bf16.mxu0 %v1246_v8  ;;  %v862_v18 = vld [vmem:[%s1654_s3] ss:$0 sm:$0xff]  ;;  %s447_s16 = scalar_lea.vmem [#allocation11], %s1515_s20  ;;  %s1248_s22 = smov 96  }
  0x84   : > { %891 = vmatprep.mubr.msk.bf16.mxu0 %vm1247_vm1, %v1246_v8  ;;  %v868_v25 = vld [vmem:[%s1658_s7] ss:$0 sm:$0xff]  ;;  %s630_s29 = scalar_lea.sflag [#allocation4], %s1483_s28  ;;  %s1093_s13 = scalar_lea.vmem %s1530_s23, 64 }
  0x85   : > { %898 = vmatpush3.bf16.msra.mxu1 %v1003_v10  ;;  %v863_v27 = vld [vmem:[%s1656_s5] ss:$0 sm:$0xff]  ;;  %p1094_p1 = scmp.ne.s32.totalorder %s1530_s23, %s1093_s13  ;;  %s1249_s26 = smov [#allocation8]  }
  0x86   : > { %890 = vmatpush3.bf16.msra.mxu0 %v1004_v11  ;;  %s1097_s1 = sshll.u32 %s1249_s26, 4  ;;  %s1098_s1 = int_to_ptr.vmem [resolvable:$false] %s1097_s1 }
  0x87   : > { %p1095_p4 = pnand %p1094_p1, %p1431_p8  ;;  %s1099_s30 = scalar_lea.vmem %s1098_s1, 128 }
  0x88   : > { %p1100_p12 = scmp.lt.s32.totalorder %s1530_s23, %s1098_s1  ;;  %p1101_p0 = scmp.lt.s32.totalorder %s1099_s30, %s1093_s13 }
  0x89   : > { %p1096_p6 = pneg %p1095_p4 }
  0x8a   : > { %p1102_p5 = por %p1101_p0, %p1100_p12 }
  0x8c   : > { %p1103_p10 = pnand %p1102_p5, %p1096_p6 }
 0x10e   : > { %v455_v2 = vpop.xlane.xlu0 %454 }
 0x10f   : > { %v457_v3 = vmul.f32 0.03125, %v455_v2 }
 0x111   : > { %v458_v4 = vsub.f32 %v449_v0, %v457_v3 }
 0x113   : > { %v459_v5 = vmul.f32 %v458_v4, %v458_v4 }
 0x115   : > { %v460_v6 = vsel %vm452_vm0, %v459_v5, 0.0 }
 0x116   : > { %461 = vadd.xlane.f32.xlu0 %v460_v6 }
 0x1a3   : > { %v462_v12 = vpop.xlane.xlu0 %461 }
 0x1a4   : > { %v463_v13 = vmul.f32 0.03125, %v462_v12 }
 0x1a6   : > { %v464_v14 = vadd.f32 1e-05, %v463_v13 }
 0x1a8   : > { %1005 = vrsqrt.f32 %v464_v14 }
 0x1b2   : > { %v1006_v15 = vpop.eup %1005 }
 0x1b3   : > { %v466_v17 = vmul.f32 %v1006_v15, %v458_v4 }
 0x1b5   : > { %v473_v19 = vmul.f32 %v861_v16, %v466_v17 }
 0x1b7   : > { %v480_v21 = vadd.f32 %v862_v18, %v473_v19 }
 0x1b9   : > { %v560_v22 = vpack.c.bf16 %v480_v21, %v480_v21  ;;  %v482_v23 = vadd.f32 %v481_v20, %v480_v21 }
 0x1bb   : > { %900 = vmatmul.mubr.msk.bf16.vlgmr.msra.gmra.mrb[0].mxu1 %vm452_vm0, %v560_v22  ;;  %v483_v24 = vpack.c.bf16 %v482_v23, %v482_v23 }
 0x1bd   : > { %892 = vmatmul.mubr.msk.bf16.vlgmr.msra.gmra.mrb[0].mxu0 %vm452_vm0, %v483_v24 }
 0x28e   : > { %v621_v26 = vpop.f32.mrb[0].mxu1 }
 0x28f   : > { %v622_v28 = vadd.f32 %v868_v25, %v621_v26  ;;  %v901_v29 = vpop.f32.mrb[1].mxu1 }
 0x290   : > { %v544_v30 = vpop.f32.mrb[0].mxu0  ;;  %v624_v31 = vpop.f32.mrb[2].mxu1 }
 0x291   : > { %v627_v32 = vpack.c.bf16 %v622_v28, %v622_v28  ;;  %v545_v33 = vadd.f32 %v863_v27, %v544_v30  ;;  %v893_v34 = vpop.f32.mrb[1].mxu0  ;;  %v902_v35 = vpop.f32.mrb[3].mxu1 }
 0x292   : > { %v547_v36 = vpop.f32.mrb[2].mxu0 }
 0x293   : > { %v550_v37 = vpack.c.bf16 %v545_v33, %v545_v33  ;;  %v894_v38 = vpop.f32.mrb[3].mxu0  ;;  %628 = vst.msk [vmem:[%s447_s16] sm:$0xf] %vm551_vm2, %v627_v32 }
 0x295   : > { %556 = vrot.lane.b32.xlu1 %v550_v37, %s1248_s22  ;;  %552 = vst.msk [vmem:[%s433_s21] sm:$0xf] %vm551_vm2, %v550_v37 }
 0x296   : > { %1106 = shalt.err (!%p1103_p10)
}
 0x297   : > { %s1107_s28 = scalar_lea.hbm %s1528_s27, 64  ;;  %s1111_s22 = scalar_lea.hbm %s1659_s8, 128 }
 0x298   : > { %p1108_p13 = scmp.ne.s32.totalorder %s1528_s27, %s1107_s28  ;;  %p1112_p3 = scmp.lt.u32.totalorder %s1528_s27, %s1659_s8 }
 0x299   : > { %p1113_p2 = scmp.lt.u32.totalorder %s1111_s22, %s1107_s28  ;;  %p1115_p1 = scmp.lt.u32.totalorder %s1107_s28, %s1528_s27 }
 0x29a   : > { %p1109_p9 = pnand %p1108_p13, %p1431_p8 }
 0x29b   : > { %p1114_p11 = por %p1113_p2, %p1112_p3 }
 0x29c   : > { %p1110_p7 = pneg %p1109_p9 }
 0x29d   : > { %p1116_p4 = por %p1115_p1, %p1114_p11 }
 0x29f   : > { %p1117_p6 = pnand %p1116_p4, %p1110_p7 }
 0x2a1   : > { %1120 = shalt.err (!%p1117_p6)
}
 0x2a2   : > { %913 = dma.vmem_to_hbm [thread:$0]  (%p1431_p8), %s1530_s23, 64, %s1528_s27, %s630_s29  }
 0x2a3   : > { %s634_s13 = sand.u32 1, %s1338_s19   ;;  %s440_s30 = scalar_lea.vmem [#allocation9], %s1515_s20 }
 0x2a4   : > { %s668_s21 = sshll.u32 %s440_s30, 4  ;;  %s682_s12 = sshll.u32 %s447_s16, 4  ;;  %s1569_s21 = int_to_ptr.vmem [resolvable:$true] %s668_s21  ;;  %s1577_s12 = int_to_ptr.vmem [resolvable:$true] %s682_s12 }
 0x2a5   : > { %s1567_s26 = scalar_lea.hbm %s1660_s9, %s1521_s4  ;;  %s1575_s23 = scalar_lea.hbm %s1661_s10, %s1521_s4 }
 0x2a6   : > { %s1580_s19 = scalar_lea.sflag [#allocation10], %s634_s13  ;;  %s1121_s20 = scalar_lea.vmem %s1569_s21, 64 }
 0x2a7   : > { %p1122_p12 = scmp.ne.s32.totalorder %s1569_s21, %s1121_s20  ;;  %s1250_s27 = smov [#allocation9]  }
 0x2a8   : > { %s1125_s16 = sshll.u32 %s1250_s27, 4  ;;  %s1126_s16 = int_to_ptr.vmem [resolvable:$false] %s1125_s16 }
 0x2a9   : > { %p1123_p0 = pnand %p1122_p12, %p1431_p8  ;;  %s1127_s29 = scalar_lea.vmem %s1126_s16, 128 }
 0x2aa   : > { %p1128_p10 = scmp.lt.s32.totalorder %s1569_s21, %s1126_s16  ;;  %p1129_p13 = scmp.lt.s32.totalorder %s1127_s29, %s1121_s20 }
 0x2ab   : > { %p1124_p5 = pneg %p1123_p0 }
 0x2ac   : > { %p1130_p9 = por %p1129_p13, %p1128_p10 }
 0x2ae   : > { %p1131_p7 = pnand %p1130_p9, %p1124_p5 }
 0x307   : > { %v557_v39 = vpop.permute.xlu1 %556 }
 0x308   : > { %559 = vst.msk [vmem:[%s440_s30] sm:$0xf] %vm551_vm2, %v557_v39 }
 0x309   : > { %1134 = shalt.err (!%p1131_p7)
}
 0x30a   : > { %s1135_s0 = scalar_lea.hbm %s1567_s26, 64  ;;  %s1139_s30 = scalar_lea.hbm %s1660_s9, 128 }
 0x30b   : > { %p1136_p3 = scmp.ne.s32.totalorder %s1567_s26, %s1135_s0  ;;  %p1140_p1 = scmp.lt.u32.totalorder %s1567_s26, %s1660_s9 }
 0x30c   : > { %p1141_p4 = scmp.lt.u32.totalorder %s1139_s30, %s1135_s0  ;;  %p1143_p12 = scmp.lt.u32.totalorder %s1135_s0, %s1567_s26 }
 0x30d   : > { %p1137_p2 = pnand %p1136_p3, %p1431_p8 }
 0x30e   : > { %p1142_p6 = por %p1141_p4, %p1140_p1 }
 0x30f   : > { %p1138_p11 = pneg %p1137_p2 }
 0x310   : > { %p1144_p0 = por %p1143_p12, %p1142_p6 }
 0x312   : > { %p1145_p5 = pnand %p1144_p0, %p1138_p11 }
 0x314   : > { %1148 = shalt.err (!%p1145_p5)
}
 0x315   : > { %914 = dma.vmem_to_hbm [thread:$0]  (%p1431_p8), %s1569_s21, 64, %s1567_s26, %s1580_s19  }
 0x316   : > { %s1149_s1 = scalar_lea.vmem %s1577_s12, 64  ;;  %s1251_s20 = smov [#allocation11]  }
 0x317   : > { %p1150_p10 = scmp.ne.s32.totalorder %s1577_s12, %s1149_s1  ;;  %s1153_s27 = sshll.u32 %s1251_s20, 4  ;;  %s1154_s27 = int_to_ptr.vmem [resolvable:$false] %s1153_s27 }
 0x318   : > { %s1155_s16 = scalar_lea.vmem %s1154_s27, 128  ;;  %p1156_p7 = scmp.lt.s32.totalorder %s1577_s12, %s1154_s27 }
 0x319   : > { %p1151_p13 = pnand %p1150_p10, %p1431_p8  ;;  %p1157_p3 = scmp.lt.s32.totalorder %s1155_s16, %s1149_s1 }
 0x31b   : > { %p1152_p9 = pneg %p1151_p13  ;;  %p1158_p2 = por %p1157_p3, %p1156_p7 }
 0x31d   : > { %p1159_p11 = pnand %p1158_p2, %p1152_p9 }
 0x31f   : > { %1162 = shalt.err (!%p1159_p11)
}
 0x320   : > { %s1163_s21 = scalar_lea.hbm %s1575_s23, 64  ;;  %s1167_s0 = scalar_lea.hbm %s1661_s10, 128 }
 0x321   : > { %p1164_p1 = scmp.ne.s32.totalorder %s1575_s23, %s1163_s21  ;;  %p1168_p12 = scmp.lt.u32.totalorder %s1575_s23, %s1661_s10 }
 0x322   : > { %p1169_p0 = scmp.lt.u32.totalorder %s1167_s0, %s1163_s21  ;;  %p1171_p10 = scmp.lt.u32.totalorder %s1163_s21, %s1575_s23 }
 0x323   : > { %p1165_p4 = pnand %p1164_p1, %p1431_p8 }
 0x324   : > { %p1170_p5 = por %p1169_p0, %p1168_p12 }
 0x325   : > { %p1166_p6 = pneg %p1165_p4 }
 0x326   : > { %p1172_p13 = por %p1171_p10, %p1170_p5 }
 0x328   : > { %p1173_p9 = pnand %p1172_p13, %p1166_p6 }
 0x32a   : > { %1176 = shalt.err (!%p1173_p9)
}
 0x32b   : > { %915 = dma.vmem_to_hbm [thread:$0]  (%p1431_p8), %s1577_s12, 64, %s1575_s23, %s1580_s19  }
 0x32c PF: > { %s1687_s30 = sld [smem:[#allocation16_spill]]  ;;  %s1688_s28 = sld [smem:[#allocation17_spill]] }
 0x32d   : > { %p1690_p3 = scmp.ge.s32.totalorder %s1239_s18, 2 }
 0x332   : > { %s694_s22 = sand.u32 1, %s1687_s30   ;;  %p1689_p7 = scmp.ne.s32.totalorder %s1688_s28, 0 }
 0x333   : > { %s695_s1 = scalar_lea.sflag [#allocation4], %s694_s22 }
 0x334   : > { %p931_p2 = pnand %p1690_p3, %p1689_p7 }
 0x336   : > { %1210 = dma.done.wait (!%p931_p2), %s695_s1, 64  }
 0x337   : > { %1212 = vsyncadd (!%p931_p2), %s695_s1, 4294967232  ;;  %s1691_s20 = sadd.s32 4294967294, %s1239_s18  }
 0x338   : > { %s703_s27 = sand.u32 1, %s1691_s20  }
 0x339   : > { %s704_s16 = scalar_lea.sflag [#allocation10], %s703_s27 }
 0x33a   : > { %1214 = dma.done.wait (!%p931_p2), %s704_s16, 128  }
 0x33b   : > { %1216 = vsyncadd (!%p931_p2), %s704_s16, 4294967168  ;;  %s31_s18 = sadd.s32 1, %s1239_s18   ;;  %s1692_s13 = smov %s1223_s14 }
 0x33c   : > { %p28_p8 = scmp.ge.s32.totalorder %s31_s18, 4   ;;  %s1693_s14 = smov %s1227_s15 }
 0x33d   : > { %s1694_s15 = smov %s1440_s25  ;;  %s1695_s16 = smov %s1235_s17 }
 0x33e   : > { %s1696_s17 = smov %s1698_s11  ;;  %30 = sbr.rel (!%p28_p8) target bundleno = 13 (0xd), region = 138 }
 0x345   :  { %718 = vsyncpa [#allocation3], 1 }
 0x346   :  { %720 = vsyncpa [#allocation3 + $0x1], 1 }
 0x347   :  { %721 = vsyncpa [#allocation6], 1 }
 0x348   :  { %722 = vsyncpa [#allocation4], 1 }
 0x349   :  { %724 = vsyncpa [#allocation4 + $0x1], 1 }
 0x34a   :  { %725 = vsyncpa [#allocation10], 1 }
 0x34b   :  { %727 = vsyncpa [#allocation10 + $0x1], 1 }

</bundles_post_ra>
